<compile_context>
chip_gen: v7x
topology: tpu7x:2x2x1
jax: 0.10.0
libtpu: 0.0.40
codegen_flags: <defaults>
</compile_context>

<pallas_src>
import functools

import jax
import jax.numpy as jnp
from jax.experimental import pallas as pl
from jax.experimental.pallas import tpu as pltpu

DILATIONS = (1, 2, 4, 8, 1, 1)   # dmb EdgeAwareRefinement dilation_list
C_FEAT = 32                      # trunk feature channels
PAD = max(DILATIONS)             # a single shared halo covers every dilation (and the pad-1 convs)
NUM_CONV = 1 + 2 * len(DILATIONS)   # conv_mix + (conv1, conv2) per block


# ----------------------------------------------------------------------------
# Bilinear upsample (align_corners=False) as separable matmuls (per batch).
# ----------------------------------------------------------------------------
def _bilinear_matrix(out_size: int, in_size: int) -> jnp.ndarray:
    """Row matrix M s.t. M @ x == F.interpolate(x, mode='bilinear', align_corners=False)."""
    scale = in_size / out_size
    dst = jnp.arange(out_size, dtype=jnp.float32)
    src = jnp.maximum((dst + 0.5) * scale - 0.5, 0.0)   # PyTorch clamps negative source coords
    x0f = jnp.floor(src)
    lam = src - x0f
    x0 = x0f.astype(jnp.int32)
    x1 = jnp.minimum(x0 + 1, in_size - 1)
    rows = jnp.arange(out_size)
    m = jnp.zeros((out_size, in_size), jnp.float32)
    m = m.at[rows, x0].add(1.0 - lam)
    m = m.at[rows, x1].add(lam)
    return m


def _upsample_kernel(x_ref, wh_ref, wwt_ref, o_ref, *, scale):
    x = x_ref[0]                                                           # (Hin, Win)
    tmp = jnp.dot(wh_ref[...], x, preferred_element_type=jnp.float32)      # (Hout, Win)
    out = jnp.dot(tmp, wwt_ref[...], preferred_element_type=jnp.float32)   # (Hout, Wout)
    o_ref[0] = out * scale


def upsample_disp(disp_bhw, out_h, out_w, scale):
    """(B, Hin, Win) -> (B, out_h, out_w) bilinear (align_corners=False), times `scale`.

    Identity (same size, scale==1) is skipped entirely: no MXU work, no HBM pass.
    """
    B, Hin, Win = disp_bhw.shape
    if (Hin, Win) == (out_h, out_w):
        return disp_bhw if float(scale) == 1.0 else disp_bhw * float(scale)
    wh = _bilinear_matrix(out_h, Hin)            # (Hout, Hin)
    wwt = _bilinear_matrix(out_w, Win).T         # (Win, Wout)
    kernel = functools.partial(_upsample_kernel, scale=float(scale))
    return pl.pallas_call(
        kernel,
        out_shape=jax.ShapeDtypeStruct((B, out_h, out_w), jnp.float32),
        grid=(B,),
        in_specs=[
            pl.BlockSpec((1, Hin, Win), lambda b: (b, 0, 0)),
            pl.BlockSpec((out_h, Hin), lambda b: (0, 0)),
            pl.BlockSpec((Win, out_w), lambda b: (0, 0)),
        ],
        out_specs=pl.BlockSpec((1, out_h, out_w), lambda b: (b, 0, 0)),
        compiler_params=pltpu.CompilerParams(dimension_semantics=("parallel",)),
    )(disp_bhw, wh, wwt)


# ----------------------------------------------------------------------------
# Fused EdgeAwareRefinement kernel: the whole conv stack in one pallas_call.
# ----------------------------------------------------------------------------
def _edge_refine_kernel(up_ref, up1_ref, img_ref, w_ref, b_ref, wres_ref, bres_ref,
                        o_ref, featpad, tmppad, *, H, W):
    C = C_FEAT
    P = PAD

    # The borders of the padded VMEM scratches provide the 'same' zero padding
    # for every conv in the stack; only interiors are ever written.
    featpad[...] = jnp.zeros_like(featpad)
    tmppad[...] = jnp.zeros_like(tmppad)

    # Fused concat((up_disp, left_image), channel): write the 4 mix channels
    # straight into the padded feature scratch.  Channels 4..C-1 stay zero and
    # the conv_mix weight rows there are zero, so the math equals a Cin=4 conv.
    mix = jnp.concatenate([up1_ref[0], img_ref[0]], axis=-1)        # (H, W, 4) f32
    featpad[P:P + H, P:P + W, 0:4] = mix

    def conv(src_pad, widx, dilation, relu):
        """3x3 dilated conv (+folded-BN shift, optional ReLU) as one im2col matmul.

        im2col slab is built from the padded VMEM scratch and fed to the MXU as a
        single (H*W, 9*C) @ (9*C, C) bf16 matmul with f32 accumulation.
        """
        base = P - dilation
        slabs = []
        for t in range(9):
            dy = base + (t // 3) * dilation
            dx = base + (t % 3) * dilation
            slabs.append(src_pad[dy:dy + H, dx:dx + W, :])          # (H, W, C) f32
        col = jnp.concatenate(slabs, axis=-1)                       # (H, W, 9*C)
        col = col.reshape(H * W, 9 * C).astype(jnp.bfloat16)
        acc = jnp.dot(col, w_ref[widx], preferred_element_type=jnp.float32)
        out = acc + b_ref[widx]                                     # (H*W, C) + (1, C), f32
        if relu:
            out = jnp.maximum(out, 0.0)
        return out                                                  # f32 (H*W, C)

    # conv_mix (3x3, dilation 1, ReLU).
    feat = conv(featpad, 0, 1, True)
    featpad[P:P + H, P:P + W, :] = feat.reshape(H, W, C)

    # 6 dilated residual blocks; the feature map never leaves VMEM, and the
    # residual add + ReLU is fused right here (no separate elementwise kernel).
    for i, d in enumerate(DILATIONS):
        out1 = conv(featpad, 1 + 2 * i, d, True)
        tmppad[P:P + H, P:P + W, :] = out1.reshape(H, W, C)
        out2 = conv(tmppad, 2 + 2 * i, d, False)
        feat = jnp.maximum(feat + out2, 0.0)                        # relu(x + conv2(relu(conv1(x))))
        featpad[P:P + H, P:P + W, :] = feat.reshape(H, W, C)

    # conv_res (3x3, Cout=1) as 9 tap-wise lane reductions -> (H, W) directly,
    # so the final store is lane-dense (W in lanes) with no (H*W, 1) relayout.
    res = jnp.zeros((H, W), jnp.float32)
    for t in range(9):
        dy = P - 1 + (t // 3)
        dx = P - 1 + (t % 3)
        slab = featpad[dy:dy + H, dx:dx + W, :]                     # (H, W, C)
        res = res + jnp.sum(slab * wres_ref[t], axis=-1)            # (H, W)
    res = res + bres_ref[...]                                       # + folded-BN shift (1, 1)
    o_ref[0] = jnp.maximum(res + up_ref[0], 0.0)                    # + up_disp, ReLU


def edge_refine_call(packed, up_bhw, img_nhwc):
    """Run the fused EdgeAwareRefinement stack.  up_bhw: (B,H,W); img_nhwc: (B,H,W,3)."""
    B, H, W = up_bhw.shape
    Hp, Wp = H + 2 * PAD, W + 2 * PAD
    kernel = functools.partial(_edge_refine_kernel, H=H, W=W)
    return pl.pallas_call(
        kernel,
        out_shape=jax.ShapeDtypeStruct((B, H, W), jnp.float32),     # lane-dense output
        grid=(B,),
        in_specs=[
            pl.BlockSpec((1, H, W), lambda b: (b, 0, 0)),           # up_disp (final residual add)
            pl.BlockSpec((1, H, W, 1), lambda b: (b, 0, 0, 0)),     # up_disp as mix channel 0
            pl.BlockSpec((1, H, W, 3), lambda b: (b, 0, 0, 0)),     # left image, NHWC
            pl.BlockSpec((NUM_CONV, 9 * C_FEAT, C_FEAT), lambda b: (0, 0, 0)),  # bf16 weights
            pl.BlockSpec((NUM_CONV, 1, C_FEAT), lambda b: (0, 0, 0)),           # f32 shifts
            pl.BlockSpec((9, 1, C_FEAT), lambda b: (0, 0, 0)),      # conv_res weights (scale folded)
            pl.BlockSpec((1, 1), lambda b: (0, 0)),                 # conv_res shift
        ],
        out_specs=pl.BlockSpec((1, H, W), lambda b: (b, 0, 0)),
        scratch_shapes=[
            pltpu.VMEM((Hp, Wp, C_FEAT), jnp.float32),              # padded feature map (resident)
            pltpu.VMEM((Hp, Wp, C_FEAT), jnp.float32),              # padded block intermediate
        ],
        compiler_params=pltpu.CompilerParams(dimension_semantics=("parallel",)),
    )(up_bhw, up_bhw[..., None], img_nhwc,
      packed["w"], packed["b"], packed["wres"], packed["bres"])


# ----------------------------------------------------------------------------
# Parameters (deterministic synthetic init; BatchNorm folded into scale/shift),
# packed once into the MXU-friendly layout used by the fused kernel.
# ----------------------------------------------------------------------------
def init_edge_aware_params(key, in_planes=4):
    def conv_p(k, cin, cout, wstd=0.05):
        kw, ks, kb = jax.random.split(k, 3)
        return {
            "w": wstd * jax.random.normal(kw, (9, cin, cout), jnp.float32),
            "scale": 1.0 + 0.01 * jax.random.normal(ks, (cout,), jnp.float32),
            "shift": 0.01 * jax.random.normal(kb, (cout,), jnp.float32),
        }

    keys = jax.random.split(key, 2 + 2 * len(DILATIONS))
    return {
        "conv_mix": conv_p(keys[0], in_planes, C_FEAT),
        "blocks": [
            {"conv1": conv_p(keys[2 + 2 * i], C_FEAT, C_FEAT),
             "conv2": conv_p(keys[3 + 2 * i], C_FEAT, C_FEAT)}
            for i in range(len(DILATIONS))
        ],
        "conv_res": conv_p(keys[1], C_FEAT, 1),
    }


def pack_edge_aware_params(params, in_planes=4):
    """Fold BN scale into the weights, pad conv_mix to Cin=C_FEAT, reshape to the
    im2col (9*Cin, Cout) layout, cast MXU operands to bf16, stack everything."""
    C = C_FEAT

    def fold(p):
        return p["w"] * p["scale"][None, None, :], p["shift"]

    w_mix, b_mix = fold(params["conv_mix"])                                   # (9, in_planes, C)
    w_mix = jnp.concatenate([w_mix, jnp.zeros((9, C - in_planes, C), jnp.float32)], axis=1)

    ws, bs = [w_mix], [b_mix]
    for blk in params["blocks"]:
        for name in ("conv1", "conv2"):
            w, b = fold(blk[name])
            ws.append(w)
            bs.append(b)

    w_all = jnp.stack([w.reshape(9 * C, C) for w in ws])                      # (13, 9C, C)
    b_all = jnp.stack([b.reshape(1, C) for b in bs])                          # (13, 1, C)

    w_res, b_res = fold(params["conv_res"])                                   # (9, C, 1), (1,)
    wres = jnp.transpose(w_res, (0, 2, 1))                                    # (9, 1, C)
    bres = b_res.reshape(1, 1)

    return {
        "w": w_all.astype(jnp.bfloat16),      # MXU operands in bf16 (f32 accumulation)
        "b": b_all.astype(jnp.float32),
        "wres": wres.astype(jnp.float32),
        "bres": bres.astype(jnp.float32),
    }


# ----------------------------------------------------------------------------
# Forward passes (NCHW public interface, matching the PyTorch module).
# ----------------------------------------------------------------------------
def edge_aware_refinement(packed, disp_nchw, left_image_nchw):
    B, _, H, W = left_image_nchw.shape
    scale = W / disp_nchw.shape[-1]
    up = upsample_disp(disp_nchw[:, 0], H, W, scale)                 # (B, H, W); identity after iter 1
    # TODO(synk): fuse this 3-channel NCHW->NHWC transpose into the kernel as well.
    img_nhwc = jnp.transpose(left_image_nchw, (0, 2, 3, 1))          # (B, H, W, 3)
    refined = edge_refine_call(packed, up, img_nhwc)                 # (B, H, W), lane-dense store
    return refined[:, None]                                          # (B, 1, H, W)


def stereonet_refinement_forward(packed_list, disps, left, right, left_image, right_image):
    """Exact analogue of StereoNetRefinement.forward (NCHW in/out)."""
    del left, right, right_image                                     # unused, parity with torch forward
    init_disp = disps[-1]                                            # (B, 1, h, w)
    B, _, H, W = left_image.shape
    scale = W / init_disp.shape[-1]
    init_full = upsample_disp(init_disp[:, 0], H, W, scale)[:, None]  # (B, 1, H, W)
    refine_disps = [init_full]
    for packed in packed_list:
        refine_disps.append(edge_aware_refinement(packed, refine_disps[-1], left_image))
    refine_disps.reverse()
    return refine_disps


# ----------------------------------------------------------------------------
if __name__ == "__main__":
    key = jax.random.PRNGKey(0)
    k1, k2, k3, k4, k5, k6, kp = jax.random.split(key, 7)

    B, H, W = 2, 16, 16
    in_planes = 4                       # 1 disparity channel + 3 image channels
    num = 1                             # number of EdgeAwareRefinement blocks

    disps = [
        5.0 * jax.random.uniform(k1, (B, 1, H // 8, W // 8), jnp.float32),
        5.0 * jax.random.uniform(k2, (B, 1, H // 4, W // 4), jnp.float32),
    ]
    left = jax.random.normal(k3, (B, in_planes, H, W), jnp.float32)    # unused (parity w/ torch)
    right = jax.random.normal(k4, (B, in_planes, H, W), jnp.float32)   # unused
    left_image = jax.random.normal(k5, (B, 3, H, W), jnp.float32)
    right_image = jax.random.normal(k6, (B, 3, H, W), jnp.float32)

    packed_list = [
        pack_edge_aware_params(init_edge_aware_params(jax.random.fold_in(kp, i), in_planes),
                               in_planes)
        for i in range(num)
    ]

    outs = stereonet_refinement_forward(packed_list, disps, left, right, left_image, right_image)
    outs = [jax.block_until_ready(o) for o in outs]

    assert len(outs) == num + 1
    for o in outs:
        assert o.shape == (B, 1, H, W) and o.dtype == jnp.float32
        assert bool(jnp.all(jnp.isfinite(o)))
        assert bool(jnp.all(o >= 0.0))   # outputs are ReLU'd / non-negative upsample
    print("KERNEL_OK")
</pallas_src>

<mosaic_0001>
module attributes {stable_mosaic.version = 11 : i64} {
  func.func @_upsample_kernel(%arg0: i32, %arg1: memref<1x4x4xf32, #tpu.memory_space<vmem>>, %arg2: memref<16x4xf32, #tpu.memory_space<vmem>>, %arg3: memref<4x16xf32, #tpu.memory_space<vmem>>, %arg4: memref<1x16x16xf32, #tpu.memory_space<vmem>>) attributes {dimension_semantics = [#tpu.dimension_semantics<parallel>], iteration_bounds = array<i64: 2>, scalar_prefetch = 0 : i64, scratch_operands = 0 : i64, tpu.core_type = #tpu.core_type<tc>, window_params = [{transform_indices = @transform_0, window_bounds = array<i64: 1, 4, 4>}, {pipeline_mode = #tpu.pipeline_mode<synchronous>, transform_indices = @transform_1, window_bounds = array<i64: 16, 4>}, {pipeline_mode = #tpu.pipeline_mode<synchronous>, transform_indices = @transform_2, window_bounds = array<i64: 4, 16>}, {transform_indices = @transform_3, window_bounds = array<i64: 1, 16, 16>}]} {
    %c0 = arith.constant 0 : index
    %c0_0 = arith.constant 0 : index
    %c0_1 = arith.constant 0 : index
    %0 = vector.load %arg1[%c0, %c0_0, %c0_1] : memref<1x4x4xf32, #tpu.memory_space<vmem>>, vector<1x4x4xf32>
    %1 = vector.shape_cast %0 : vector<1x4x4xf32> to vector<4x4xf32>
    %c0_2 = arith.constant 0 : index
    %c0_3 = arith.constant 0 : index
    %2 = vector.load %arg2[%c0_2, %c0_3] : memref<16x4xf32, #tpu.memory_space<vmem>>, vector<16x4xf32>
    %cst = arith.constant dense<0.000000e+00> : vector<16x4xf32>
    %3 = tpu.matmul %2, %1, %cst {dimension_numbers = #tpu.dot_dimension_numbers<[1], [0], [0], [1], [0, 0, 1, 1], [], []>} : vector<16x4xf32>, vector<4x4xf32>, vector<16x4xf32> -> vector<16x4xf32>
    %c0_4 = arith.constant 0 : index
    %c0_5 = arith.constant 0 : index
    %4 = vector.load %arg3[%c0_4, %c0_5] : memref<4x16xf32, #tpu.memory_space<vmem>>, vector<4x16xf32>
    %cst_6 = arith.constant dense<0.000000e+00> : vector<16x16xf32>
    %5 = tpu.matmul %3, %4, %cst_6 {dimension_numbers = #tpu.dot_dimension_numbers<[1], [0], [0], [1], [0, 0, 1, 1], [], []>} : vector<16x4xf32>, vector<4x16xf32>, vector<16x16xf32> -> vector<16x16xf32>
    %cst_7 = arith.constant 4.000000e+00 : f32
    %6 = vector.broadcast %cst_7 : f32 to vector<16x16xf32>
    %7 = arith.mulf %5, %6 : vector<16x16xf32>
    %c0_8 = arith.constant 0 : index
    %c0_9 = arith.constant 0 : index
    %c0_10 = arith.constant 0 : index
    %8 = vector.load %arg4[%c0_8, %c0_9, %c0_10] : memref<1x16x16xf32, #tpu.memory_space<vmem>>, vector<1x16x16xf32>
    %9 = vector.shape_cast %8 : vector<1x16x16xf32> to vector<16x16xf32>
    %10 = vector.shape_cast %7 : vector<16x16xf32> to vector<1x16x16xf32>
    tpu.vector_store %arg4[%c0_8, %c0_9, %c0_10], %10 {strides = array<i32>} : memref<1x16x16xf32, #tpu.memory_space<vmem>>, vector<1x16x16xf32>,
    return
  }
  func.func @transform_0(%arg0: i32) -> (i32, i32, i32) {
    %c0_i32 = arith.constant 0 : i32
    %c0_i32_0 = arith.constant 0 : i32
    %c0_i32_1 = arith.constant 0 : i32
    return %arg0, %c0_i32, %c0_i32_0 : i32, i32, i32
  }
  func.func @transform_1(%arg0: i32) -> (i32, i32) {
    %c0_i32 = arith.constant 0 : i32
    %c0_i32_0 = arith.constant 0 : i32
    %c0_i32_1 = arith.constant 0 : i32
    return %c0_i32, %c0_i32_0 : i32, i32
  }
  func.func @transform_2(%arg0: i32) -> (i32, i32) {
    %c0_i32 = arith.constant 0 : i32
    %c0_i32_0 = arith.constant 0 : i32
    %c0_i32_1 = arith.constant 0 : i32
    return %c0_i32, %c0_i32_0 : i32, i32
  }
  func.func @transform_3(%arg0: i32) -> (i32, i32, i32) {
    %c0_i32 = arith.constant 0 : i32
    %c0_i32_0 = arith.constant 0 : i32
    %c0_i32_1 = arith.constant 0 : i32
    return %arg0, %c0_i32, %c0_i32_0 : i32, i32, i32
  }
}

</mosaic_0001>

<bundles_post_ra>
// kernel: tpu_custom_call.1
= control target key start
LH: loop header
LB: loop body
LE: loop exit
PB: predicated region body
PF: predicated region fallthrough
CT: control target
= control target key end

     0   :  { %8 = vsyncpa [#allocation3], 0  ;;  %s699_s0 = inlined_call_operand.vmem [shape: f32[2,4,4], index: 0, kind: input, shape index: {}]   ;;  %s700_s1 = inlined_call_operand.vmem [shape: f32[16,4], index: 1, kind: input, shape index: {}]   ;;  %s701_s2 = inlined_call_operand.vmem [shape: f32[4,16], index: 2, kind: input, shape index: {}]   ;;  %s702_s3 = inlined_call_operand.hbm [shape: f32[2,16,16], index: 3, kind: output, shape index: {}]  }
   0x1   :  { %10 = vsyncpa [#allocation3 + $0x1], 0  ;;  %s583_s12 = smov 0   ;;  %s585_s13 = smov 0  }
   0x2   :  { %s587_s14 = smov 0   ;;  %s589_s15 = smov 0  }
   0x3 LB: > { %s604_s16 = sadd.s32 4294967295, %s558_s15   ;;  %s421_s17 = sadd.s32 4294967294, %s558_s15   ;;  %s558_s15 = sphi %s589_s15, %s708_s15   ;;  %s554_s14 = sphi %s587_s14, %s707_s14   ;;  %s550_s13 = sphi %s585_s13, %s706_s13   ;;  %s546_s12 = sphi %s583_s12, %s705_s12  }
   0x4   : > { %s608_s18 = sadd.s32 1, %s558_s15   ;;  %s91_s19 = sadd.s32 1, %s554_s14 }
   0x5   : > { %s88_s20 = ssub.s32 %s558_s15, %s608_s18  ;;  %p101_p0 = scmp.ne.s32.totalorder %s554_s14, %s550_s13 }
   0x6   : > { %p89_p1 = scmp.eq.s32.totalorder %s88_s20, 0  ;;  %p102_p2 = scmp.eq.s32.totalorder %s604_s16, 1 }
   0x7   : > { %p107_p3 = scmp.ne.s32.totalorder %s550_s13, %s546_s12  ;;  %p108_p4 = scmp.eq.s32.totalorder %s421_s17, 1 }
   0x8   : > { %s619_s21 = scalar_select %p89_p1, %s554_s14, %s91_s19  }
   0x9   : > { %p621_p5 = por %p102_p2, %p101_p0  ;;  %p625_p6 = por %p108_p4, %p107_p3 }
   0xa   : > { %p424_p7 = scmp.ge.s32.totalorder %s558_s15, 1  ;;  %p139_p8 = scmp.lt.s32.totalorder %s558_s15, 3 }
   0xc   : > { %p140_p9 = pnand %p424_p7, %p139_p8 }
   0xd   : > { %p162_p10 = scmp.lt.s32.totalorder (!%p140_p9), %s604_s16, 1  ;;  %v167_v0 = vld [vmem:[%s700_s1] sm:$0xff] (!%p140_p9)  ;;  %vm169_vm0 = vcmask (!%p140_p9), 31744   ;;  %vm176_vm1 = vcmask (!%p140_p9), 1043456   ;;  %v168_v2 = vld [vmem:[%s700_s1 + $0x8] sm:$0xff] (!%p140_p9)  ;;  %s159_s8 = sand.u32 (!%p140_p9), 1, %s550_s13  }
   0xe   : > { %143 = sbr.rel (%p140_p9) target bundleno = 472 (0x1d8), region = 32  ;;  %447 = vmatprep.mubr.msk.f32.mxu0 (!%p140_p9), %vm169_vm0, %v167_v0  ;;  %v255_v3 = vld [vmem:[%s701_s2] sm:$0xf] (!%p140_p9)  ;;  %s425_s9 = sshll.u32 (!%p140_p9), %s159_s8, 4  ;;  %vm342_vm2 = vcmask (!%p140_p9), 130048  }
   0xf   : > { %450 = vmatprep.subr.msk.mxu1 (!%p140_p9), %vm176_vm1, %v255_v3  ;;  %s161_s10 = scalar_lea.vmem (!%p140_p9), [#allocation2], %s425_s9  ;;  %s438_s17 = sshll.u32 (!%p140_p9), %s604_s16, 8 }
  0x10   : > { %451 = vmatpush3.msk.msra.mxu1 (!%p140_p9), %vm176_vm1, %v255_v3  ;;  %s359_s11 = sshll.u32 (!%p140_p9), %s161_s10, 4  ;;  %s656_s24 = scalar_lea.hbm (!%p140_p9), %s702_s3, %s438_s17  ;;  %s651_s11 = int_to_ptr.vmem [resolvable:$true] %s359_s11 }
  0x11   : > { %s658_s25 = scalar_lea.sflag (!%p140_p9), [#allocation3], %s159_s8 }
  0x15   : > { %s163_s26 = scalar_select %p162_p10, %s604_s16, 1 }
  0x16   : > { %s496_s16 = scalar_lea.vmem %s651_s11, 256 }
  0x17   : > { %s426_s27 = sshll.u32 %s163_s26, 2  ;;  %p497_p11 = scmp.ne.s32.totalorder %s651_s11, %s496_s16 }
  0x18   : > { %s165_s30 = scalar_lea.vmem %s699_s0, %s426_s27  ;;  %s560_s26 = smov [#allocation2]  }
  0x19   : > { %v166_v1 = vld [vmem:[%s165_s30] sm:$0xf]  ;;  %p498_p12 = pnand %p497_p11, %p621_p5  ;;  %s500_s27 = sshll.u32 %s560_s26, 4  ;;  %s501_s27 = int_to_ptr.vmem [resolvable:$false] %s500_s27 }
  0x1a   : > { %445 = vmatprep.subr.msk.mxu0 %vm176_vm1, %v166_v1  ;;  %s502_s28 = scalar_lea.vmem %s501_s27, 512  ;;  %p503_p0 = scmp.lt.s32.totalorder %s651_s11, %s501_s27 }
  0x1b   : > { %446 = vmatpush3.msk.msra.mxu0 %vm176_vm1, %v166_v1  ;;  %p499_p13 = pneg %p498_p12  ;;  %p504_p1 = scmp.lt.s32.totalorder %s502_s28, %s496_s16 }
  0x1c   : > { %448 = vmatmul.mubr.msk.f32.vlgmr.msra.gmra.mrb[0].mxu0 %vm169_vm0, %v168_v2 }
  0x1d   : > { %p505_p2 = por %p504_p1, %p503_p0 }
  0x1f   : > { %p506_p3 = pnand %p505_p2, %p499_p13 }
  0xef   : > { %v449_v4 = vpop.f32.mrb[0].mxu0 }
  0xf0   : > { %v246_v5 = vpop.f32.mrb[1].mxu0 }
  0xf1   : > { %452 = vmatprep.mubr.msk.f32.mxu1 %vm169_vm0, %v246_v5 }
  0xf2   : > { %453 = vmatmul.mubr.msk.f32.vlgmr.msra.gmra.mrb[0].mxu1 %vm169_vm0, %v449_v4 }
 0x1c5   : > { %v454_v6 = vpop.f32.mrb[0].mxu1 }
 0x1c6   : > { %v341_v7 = vmul.f32 4.0, %v454_v6  ;;  %v331_v8 = vpop.f32.mrb[1].mxu1 }
 0x1c7   : > { %v340_v9 = vmul.f32 4.0, %v331_v8 }
 0x1c8   : > { %344 = vst.msk [vmem:[%s161_s10 + $0x8] sm:$0xff] %vm342_vm2, %v341_v7 }
 0x1c9   : > { %343 = vst.msk [vmem:[%s161_s10] sm:$0xff] %vm342_vm2, %v340_v9 }
 0x1ca   : > { %509 = shalt.err (!%p506_p3)
}
 0x1cb   : > { %s510_s29 = scalar_lea.hbm %s656_s24, 256  ;;  %s514_s5 = scalar_lea.hbm %s702_s3, 512 }
 0x1cc   : > { %p511_p4 = scmp.ne.s32.totalorder %s656_s24, %s510_s29  ;;  %p515_p9 = scmp.lt.u32.totalorder %s656_s24, %s702_s3 }
 0x1cd   : > { %p516_p10 = scmp.lt.u32.totalorder %s514_s5, %s510_s29  ;;  %p518_p12 = scmp.lt.u32.totalorder %s510_s29, %s656_s24 }
 0x1ce   : > { %p512_p7 = pnand %p511_p4, %p621_p5 }
 0x1cf   : > { %p517_p11 = por %p516_p10, %p515_p9 }
 0x1d0   : > { %p513_p8 = pneg %p512_p7 }
 0x1d1   : > { %p519_p13 = por %p518_p12, %p517_p11 }
 0x1d3   : > { %p520_p0 = pnand %p519_p13, %p513_p8 }
 0x1d5   : > { %523 = shalt.err (!%p520_p0)
}
 0x1d6   : > { %s561_s8 = smov 128   ;;  %s562_s9 = smov 8  }
 0x1d7   : > { %455 = dma.vmem_to_hbm [thread:$0]  (%p621_p5), %s651_s11, 256, %s656_s24, %s658_s25, %s561_s8, %s561_s8, %s562_s9  }
 0x1d8 PF: > { %p461_p1 = scmp.ge.s32.totalorder %s558_s15, 2  ;;  %s374_s10 = sand.u32 1, %s546_s12  }
 0x1d9   : > { %s375_s17 = scalar_lea.sflag [#allocation3], %s374_s10 }
 0x1da   : > { %p458_p2 = pnand %p461_p1, %p625_p6 }
 0x1dc   : > { %541 = dma.done.wait (!%p458_p2), %s375_s17, 256  }
 0x1dd   : > { %543 = vsyncadd (!%p458_p2), %s375_s17, 4294967040  ;;  %p13_p3 = scmp.ge.s32.totalorder %s608_s18, 4   ;;  %s705_s12 = smov %s550_s13 }
 0x1de   : > { %s706_s13 = smov %s554_s14  ;;  %s707_s14 = smov %s619_s21 }
 0x1df   : > { %s708_s15 = smov %s608_s18  ;;  %15 = sbr.rel (!%p13_p3) target bundleno = 3 (0x3), region = 67 }
 0x1e6   :  { %380 = vsyncpa [#allocation3], 1 }
 0x1e7   :  { %382 = vsyncpa [#allocation3 + $0x1], 1 }

</bundles_post_ra>
